<compile_context>
chip_gen: v7x
topology: tpu7x:2x2x1
jax: 0.10.0
libtpu: 0.0.40
codegen_flags: <defaults>
</compile_context>

<pallas_src>
import jax
import jax.numpy as jnp
from jax.experimental import pallas as pl
from jax.experimental.pallas import tpu as pltpu

K1 = 784      # fc1 in  (natural, unpadded; equals full array dim in BlockSpec)
H1_PAD = 128  # fc1 out (already lane-dense)
H2_PAD = 128  # fc2 out 64 -> 128
NO_PAD = 128  # fc3 out 10 -> 128

MIN_TILE = 16   # bf16 packs 16 sublanes per vreg
MAX_TILE = 1024


def _round_up(a, m):
    return ((a + m - 1) // m) * m


def _choose_tile(B):
    """Batch tile: multiple of 16; >=2 (even) grid steps for B > 256 (v7x)."""
    if B <= 256:
        return _round_up(max(B, MIN_TILE), MIN_TILE)
    n_steps = max(2, pl.cdiv(B, MAX_TILE))
    n_steps = _round_up(n_steps, 2)          # balanced halves across 2 TCs
    return _round_up(pl.cdiv(B, n_steps), MIN_TILE)


def mlp_kernel(x_ref, w1_ref, w2_ref, w3_ref, b_ref, o_ref):
    # Packed biases: row 0 = b1, row 1 = b2 (zero-padded), row 2 = b3 (zero-padded).
    b_all = b_ref[...]                      # (8, 128) f32
    b1 = b_all[0:1, :]
    b2 = b_all[1:2, :]
    b3 = b_all[2:3, :]

    # fc1 + relu: cast x to bf16 in-kernel (no wrapper pad/cast pass over x),
    # f32 accumulation / bias / relu.
    x = x_ref[...].astype(jnp.bfloat16)                       # (TB, 784)
    h1 = jnp.dot(x, w1_ref[...], preferred_element_type=jnp.float32)
    h1 = jnp.maximum(h1 + b1, 0.0)

    # fc2 + relu
    h2 = jnp.dot(h1.astype(jnp.bfloat16), w2_ref[...],
                 preferred_element_type=jnp.float32)
    h2 = jnp.maximum(h2 + b2, 0.0)

    # fc3 (no activation). Padded columns of w2/b2 are zero, so the padded
    # lanes of h2 are exactly zero and contribute nothing through w3.
    h3 = jnp.dot(h2.astype(jnp.bfloat16), w3_ref[...],
                 preferred_element_type=jnp.float32)
    o_ref[...] = (h3 + b3).astype(o_ref.dtype)                # bf16 store


def pack_params(params):
    """One-time packing of (in, out)-layout f32 params into kernel layout."""
    w1, b1, w2, b2, w3, b3 = params
    w1_p = w1.astype(jnp.bfloat16)                                    # (784, 128)
    w2_p = jnp.zeros((H1_PAD, H2_PAD), jnp.bfloat16).at[:128, :64].set(
        w2.astype(jnp.bfloat16))
    w3_p = jnp.zeros((H2_PAD, NO_PAD), jnp.bfloat16).at[:64, :10].set(
        w3.astype(jnp.bfloat16))
    # Pack the 3 biases (f32) into one (8, 128) block -> single DMA.
    b_pack = jnp.zeros((8, 128), jnp.float32)
    b_pack = b_pack.at[0, :128].set(b1.reshape(-1))
    b_pack = b_pack.at[1, :64].set(b2.reshape(-1))
    b_pack = b_pack.at[2, :10].set(b3.reshape(-1))
    return w1_p, w2_p, w3_p, b_pack


@jax.jit
def mlp_forward(x_nchw, packed_params):
    w1_p, w2_p, w3_p, b_pack = packed_params
    B = x_nchw.shape[0]
    x = x_nchw.reshape(B, -1)              # torch.flatten(x, 1) -> (B, 784) f32

    TB = _choose_tile(B)
    B_pad = _round_up(B, TB)
    if B_pad != B:                          # only pad rows when needed
        x = jnp.pad(x, ((0, B_pad - B), (0, 0)))

    grid = (B_pad // TB,)
    out = pl.pallas_call(
        mlp_kernel,
        out_shape=jax.ShapeDtypeStruct((B_pad, NO_PAD), jnp.bfloat16),
        grid=grid,
        in_specs=[
            pl.BlockSpec((TB, K1), lambda i: (i, 0)),          # x batch tile (f32)
            pl.BlockSpec((K1, H1_PAD), lambda i: (0, 0)),      # weights stay
            pl.BlockSpec((H1_PAD, H2_PAD), lambda i: (0, 0)),  # VMEM-resident
            pl.BlockSpec((H2_PAD, NO_PAD), lambda i: (0, 0)),  # across grid
            pl.BlockSpec((8, 128), lambda i: (0, 0)),          # packed biases
        ],
        out_specs=pl.BlockSpec((TB, NO_PAD), lambda i: (i, 0)),
        compiler_params=pltpu.CompilerParams(
            dimension_semantics=("parallel",),
        ),
    )(x, w1_p, w2_p, w3_p, b_pack)

    # Slice out the real batch / the 10 logits, return f32 like the torch module.
    return out[:B, :10].astype(jnp.float32)


def init_params(key):
    # Deterministic init mimicking nn.Linear default (uniform +/- 1/sqrt(fan_in)),
    # stored transposed as (in_features, out_features).
    dims = [(784, 128), (128, 64), (64, 10)]
    params = []
    for i, (fan_in, fan_out) in enumerate(dims):
        kw, kb = jax.random.split(jax.random.fold_in(key, i))
        bound = 1.0 / jnp.sqrt(fan_in)
        w = jax.random.uniform(kw, (fan_in, fan_out), jnp.float32, -bound, bound)
        b = jax.random.uniform(kb, (1, fan_out), jnp.float32, -bound, bound)
        params.extend([w, b])
    return tuple(params)


def reference_forward(x_nchw, params):
    # Pure f32 reference with identical semantics to the PyTorch module.
    w1, b1, w2, b2, w3, b3 = params
    x = x_nchw.reshape(x_nchw.shape[0], -1)
    h1 = jnp.maximum(x @ w1 + b1, 0.0)
    h2 = jnp.maximum(h1 @ w2 + b2, 0.0)
    return h2 @ w3 + b3


if __name__ == "__main__":
    key = jax.random.PRNGKey(0)
    kx, kp = jax.random.split(key)
    # MNIST-like input: batch=8, 1 channel, 28x28 (flattens to 784 for fc1).
    x = jax.random.normal(kx, (8, 1, 28, 28), jnp.float32)
    params = init_params(kp)

    # One-time weight packing (amortized across all forward calls).
    packed = pack_params(params)
    packed = jax.block_until_ready(packed)

    out = mlp_forward(x, packed)
    out = jax.block_until_ready(out)

    ref = reference_forward(x, params)
    assert out.shape == (8, 10)
    # Tolerance loosened vs the f32 reference because matmul operands are
    # quantized to bf16 and the output is stored bf16 (accumulation stays f32).
    assert jnp.allclose(out, ref, atol=5e-2, rtol=5e-2), (
        f"max abs err = {jnp.max(jnp.abs(out - ref))}")
    print("KERNEL_OK")
</pallas_src>

<mosaic_0001>
module attributes {stable_mosaic.version = 11 : i64} {
  func.func @mlp_kernel(%arg0: i32, %arg1: memref<16x784xf32, #tpu.memory_space<vmem>>, %arg2: memref<784x128xbf16, #tpu.memory_space<vmem>>, %arg3: memref<128x128xbf16, #tpu.memory_space<vmem>>, %arg4: memref<128x128xbf16, #tpu.memory_space<vmem>>, %arg5: memref<8x128xf32, #tpu.memory_space<vmem>>, %arg6: memref<16x128xbf16, #tpu.memory_space<vmem>>) attributes {dimension_semantics = [#tpu.dimension_semantics<parallel>], iteration_bounds = array<i64: 1>, scalar_prefetch = 0 : i64, scratch_operands = 0 : i64, tpu.core_type = #tpu.core_type<tc>, window_params = [{transform_indices = @transform_0, window_bounds = array<i64: 16, 784>}, {pipeline_mode = #tpu.pipeline_mode<synchronous>, transform_indices = @transform_1, window_bounds = array<i64: 784, 128>}, {pipeline_mode = #tpu.pipeline_mode<synchronous>, transform_indices = @transform_2, window_bounds = array<i64: 128, 128>}, {pipeline_mode = #tpu.pipeline_mode<synchronous>, transform_indices = @transform_3, window_bounds = array<i64: 128, 128>}, {pipeline_mode = #tpu.pipeline_mode<synchronous>, transform_indices = @transform_4, window_bounds = array<i64: 8, 128>}, {transform_indices = @transform_5, window_bounds = array<i64: 16, 128>}]} {
    %c0 = arith.constant 0 : index
    %c0_0 = arith.constant 0 : index
    %0 = vector.load %arg5[%c0, %c0_0] : memref<8x128xf32, #tpu.memory_space<vmem>>, vector<8x128xf32>
    %1 = vector.extract_strided_slice %0 {offsets = [0, 0], sizes = [1, 128], strides = [1, 1]} : vector<8x128xf32> to vector<1x128xf32>
    %2 = vector.extract_strided_slice %0 {offsets = [1, 0], sizes = [1, 128], strides = [1, 1]} : vector<8x128xf32> to vector<1x128xf32>
    %3 = vector.extract_strided_slice %0 {offsets = [2, 0], sizes = [1, 128], strides = [1, 1]} : vector<8x128xf32> to vector<1x128xf32>
    %c0_1 = arith.constant 0 : index
    %c0_2 = arith.constant 0 : index
    %4 = vector.load %arg1[%c0_1, %c0_2] : memref<16x784xf32, #tpu.memory_space<vmem>>, vector<16x784xf32>
    %5 = arith.truncf %4 : vector<16x784xf32> to vector<16x784xbf16>
    %c0_3 = arith.constant 0 : index
    %c0_4 = arith.constant 0 : index
    %6 = vector.load %arg2[%c0_3, %c0_4] : memref<784x128xbf16, #tpu.memory_space<vmem>>, vector<784x128xbf16>
    %cst = arith.constant dense<0.000000e+00> : vector<16x128xf32>
    %7 = tpu.matmul %5, %6, %cst {dimension_numbers = #tpu.dot_dimension_numbers<[1], [0], [0], [1], [0, 0, 1, 1], [], []>} : vector<16x784xbf16>, vector<784x128xbf16>, vector<16x128xf32> -> vector<16x128xf32>
    %8 = vector.broadcast %1 : vector<1x128xf32> to vector<16x128xf32>
    %9 = arith.addf %7, %8 : vector<16x128xf32>
    %cst_5 = arith.constant 0.000000e+00 : f32
    %10 = vector.broadcast %cst_5 : f32 to vector<16x128xf32>
    %11 = arith.maximumf %9, %10 : vector<16x128xf32>
    %12 = arith.truncf %11 : vector<16x128xf32> to vector<16x128xbf16>
    %c0_6 = arith.constant 0 : index
    %c0_7 = arith.constant 0 : index
    %13 = vector.load %arg3[%c0_6, %c0_7] : memref<128x128xbf16, #tpu.memory_space<vmem>>, vector<128x128xbf16>
    %cst_8 = arith.constant dense<0.000000e+00> : vector<16x128xf32>
    %14 = tpu.matmul %12, %13, %cst_8 {dimension_numbers = #tpu.dot_dimension_numbers<[1], [0], [0], [1], [0, 0, 1, 1], [], []>} : vector<16x128xbf16>, vector<128x128xbf16>, vector<16x128xf32> -> vector<16x128xf32>
    %15 = vector.broadcast %2 : vector<1x128xf32> to vector<16x128xf32>
    %16 = arith.addf %14, %15 : vector<16x128xf32>
    %cst_9 = arith.constant 0.000000e+00 : f32
    %17 = vector.broadcast %cst_9 : f32 to vector<16x128xf32>
    %18 = arith.maximumf %16, %17 : vector<16x128xf32>
    %19 = arith.truncf %18 : vector<16x128xf32> to vector<16x128xbf16>
    %c0_10 = arith.constant 0 : index
    %c0_11 = arith.constant 0 : index
    %20 = vector.load %arg4[%c0_10, %c0_11] : memref<128x128xbf16, #tpu.memory_space<vmem>>, vector<128x128xbf16>
    %cst_12 = arith.constant dense<0.000000e+00> : vector<16x128xf32>
    %21 = tpu.matmul %19, %20, %cst_12 {dimension_numbers = #tpu.dot_dimension_numbers<[1], [0], [0], [1], [0, 0, 1, 1], [], []>} : vector<16x128xbf16>, vector<128x128xbf16>, vector<16x128xf32> -> vector<16x128xf32>
    %22 = vector.broadcast %3 : vector<1x128xf32> to vector<16x128xf32>
    %23 = arith.addf %21, %22 : vector<16x128xf32>
    %24 = arith.truncf %23 : vector<16x128xf32> to vector<16x128xbf16>
    %c0_13 = arith.constant 0 : index
    %c0_14 = arith.constant 0 : index
    %25 = vector.load %arg6[%c0_13, %c0_14] : memref<16x128xbf16, #tpu.memory_space<vmem>>, vector<16x128xbf16>
    tpu.vector_store %arg6[%c0_13, %c0_14], %24 {strides = array<i32>} : memref<16x128xbf16, #tpu.memory_space<vmem>>, vector<16x128xbf16>,
    return
  }
  func.func @transform_0(%arg0: i32) -> (i32, i32) {
    %c0_i32 = arith.constant 0 : i32
    %c0_i32_0 = arith.constant 0 : i32
    return %arg0, %c0_i32 : i32, i32
  }
  func.func @transform_1(%arg0: i32) -> (i32, i32) {
    %c0_i32 = arith.constant 0 : i32
    %c0_i32_0 = arith.constant 0 : i32
    %c0_i32_1 = arith.constant 0 : i32
    return %c0_i32, %c0_i32_0 : i32, i32
  }
  func.func @transform_2(%arg0: i32) -> (i32, i32) {
    %c0_i32 = arith.constant 0 : i32
    %c0_i32_0 = arith.constant 0 : i32
    %c0_i32_1 = arith.constant 0 : i32
    return %c0_i32, %c0_i32_0 : i32, i32
  }
  func.func @transform_3(%arg0: i32) -> (i32, i32) {
    %c0_i32 = arith.constant 0 : i32
    %c0_i32_0 = arith.constant 0 : i32
    %c0_i32_1 = arith.constant 0 : i32
    return %c0_i32, %c0_i32_0 : i32, i32
  }
  func.func @transform_4(%arg0: i32) -> (i32, i32) {
    %c0_i32 = arith.constant 0 : i32
    %c0_i32_0 = arith.constant 0 : i32
    %c0_i32_1 = arith.constant 0 : i32
    return %c0_i32, %c0_i32_0 : i32, i32
  }
  func.func @transform_5(%arg0: i32) -> (i32, i32) {
    %c0_i32 = arith.constant 0 : i32
    %c0_i32_0 = arith.constant 0 : i32
    return %arg0, %c0_i32 : i32, i32
  }
}

</mosaic_0001>

<bundles_post_ra>
// kernel: mlp_forward.1
= control target key start
LH: loop header
LB: loop body
LE: loop exit
PB: predicated region body
PF: predicated region fallthrough
CT: control target
= control target key end

     0   :  { %v1119_v43 = vmov 0.0   ;;  %vm1120_vm0 = vmmov 0   ;;  %vm439_vm1 = vcmask 130048   ;;  %s1417_s1 = inlined_call_operand.vmem [shape: bf16[784,128], index: 1, kind: input, shape index: {}]   ;;  %s1418_s0 = inlined_call_operand.vmem [shape: f32[16,784], index: 0, kind: input, shape index: {}]   ;;  %s1419_s2 = inlined_call_operand.vmem [shape: bf16[128,128], index: 2, kind: input, shape index: {}]   ;;  %s1420_s3 = inlined_call_operand.vmem [shape: bf16[128,128], index: 3, kind: input, shape index: {}]   ;;  %s1421_s4 = inlined_call_operand.vmem [shape: f32[8,128], index: 4, kind: input, shape index: {}]   ;;  %s1422_s5 = inlined_call_operand.vmem [shape: bf16[16,128], index: 5, kind: output, shape index: {}]  }
   0x1   :  { %v1054_v0 = vld [vmem:[%s1417_s1 + $0x40] sm:$0xff]   ;;  %v1058_v4 = vld [vmem:[%s1417_s1 + $0x48] sm:$0xff]   ;;  %v1062_v8 = vld [vmem:[%s1417_s1 + $0x50] sm:$0xff]  }
   0x2   :  { %v1055_v1 = vld [vmem:[%s1417_s1] sm:$0xff]   ;;  %920 = vmatprep.subr.bf16.mxu0 %v1054_v0  ;;  %v1059_v5 = vld [vmem:[%s1417_s1 + $0x8] sm:$0xff]   ;;  %v1063_v9 = vld [vmem:[%s1417_s1 + $0x10] sm:$0xff]  }
   0x3   :  { %v1056_v2 = vld [vmem:[%s1417_s1 + $0xc0] sm:$0xff]   ;;  %921 = vmatpush3.bf16.msra.mxu0 %v1055_v1  ;;  %v1060_v6 = vld [vmem:[%s1417_s1 + $0xc8] sm:$0xff]   ;;  %v1064_v10 = vld [vmem:[%s1417_s1 + $0xd0] sm:$0xff]  }
   0x4   :  { %v1057_v3 = vld [vmem:[%s1417_s1 + $0x80] sm:$0xff]   ;;  %942 = vmatprep.subr.bf16.mxu1 %v1056_v2  ;;  %922 = vmatprep.subr.bf16.mxu0 %v1058_v4  ;;  %v1061_v7 = vld [vmem:[%s1417_s1 + $0x88] sm:$0xff]   ;;  %v1065_v11 = vld [vmem:[%s1417_s1 + $0x90] sm:$0xff]  }
   0x5   :  { %943 = vmatpush3.bf16.msra.mxu1 %v1057_v3  ;;  %v1066_v12 = vld [vmem:[%s1417_s1 + $0x58] sm:$0xff]   ;;  %v1070_v16 = vld [vmem:[%s1417_s1 + $0x60] sm:$0xff]   ;;  %v1074_v20 = vld [vmem:[%s1417_s1 + $0x68] sm:$0xff]  }
   0x6   :  { %944 = vmatprep.subr.bf16.mxu1 %v1060_v6  ;;  %v1067_v13 = vld [vmem:[%s1417_s1 + $0x18] sm:$0xff]   ;;  %v1071_v17 = vld [vmem:[%s1417_s1 + $0x20] sm:$0xff]   ;;  %v1075_v21 = vld [vmem:[%s1417_s1 + $0x28] sm:$0xff]  }
   0x7   :  { %923 = vmatpush3.bf16.msra.mxu0 %v1059_v5  ;;  %v1068_v14 = vld [vmem:[%s1417_s1 + $0xd8] sm:$0xff]   ;;  %v1072_v18 = vld [vmem:[%s1417_s1 + $0xe0] sm:$0xff]   ;;  %v1076_v22 = vld [vmem:[%s1417_s1 + $0xe8] sm:$0xff]  }
   0x8   :  { %924 = vmatprep.subr.bf16.mxu0 %v1062_v8  ;;  %v1069_v15 = vld [vmem:[%s1417_s1 + $0x98] sm:$0xff]   ;;  %v1073_v19 = vld [vmem:[%s1417_s1 + $0xa0] sm:$0xff]   ;;  %v1077_v23 = vld [vmem:[%s1417_s1 + $0xa8] sm:$0xff]  }
   0x9   :  { %945 = vmatpush3.bf16.msra.mxu1 %v1061_v7  ;;  %v1078_v24 = vld [vmem:[%s1417_s1 + $0x70] sm:$0xff]   ;;  %v1082_v28 = vld [vmem:[%s1417_s1 + $0x78] sm:$0xff]   ;;  %v23_v31 = vld [vmem:[%s1418_s0 + $0x8] sm:$0xff] }
   0xa   :  { %946 = vmatprep.subr.bf16.mxu1 %v1064_v10  ;;  %v1079_v25 = vld [vmem:[%s1417_s1 + $0x30] sm:$0xff]   ;;  %v1083_v29 = vld [vmem:[%s1417_s1 + $0x38] sm:$0xff]   ;;  %v30_v32 = vld [vmem:[%s1418_s0 + $0x40] sm:$0xff] }
   0xb   :  { %925 = vmatpush3.bf16.msra.mxu0 %v1063_v9  ;;  %v1080_v26 = vld [vmem:[%s1417_s1 + $0xf0] sm:$0xff]   ;;  %v1084_v30 = vld [vmem:[%s1417_s1 + $0xf8] sm:$0xff]   ;;  %v37_v33 = vpack.c.bf16 %v30_v32, %v23_v31  ;;  %v22_v35 = vld [vmem:[%s1418_s0] sm:$0xff] }
   0xc   :  { %926 = vmatprep.subr.bf16.mxu0 %v1066_v12  ;;  %v1081_v27 = vld [vmem:[%s1417_s1 + $0xb0] sm:$0xff]   ;;  %v1085_v34 = vld [vmem:[%s1417_s1 + $0xb8] sm:$0xff]   ;;  %v1086_v38 = vld [vmem:[%s1417_s1 + $0x140] sm:$0xff]  }
   0xd   :  { %947 = vmatpush3.bf16.msra.mxu1 %v1065_v11  ;;  %v29_v36 = vld [vmem:[%s1418_s0 + $0x38] sm:$0xff]  ;;  %475 = vmatprep.mubr.bf16.mxu0 %v37_v33  ;;  %v32_v40 = vld [vmem:[%s1418_s0 + $0x50] sm:$0xff]  ;;  %v1087_v42 = vld [vmem:[%s1417_s1 + $0x100] sm:$0xff]  }
   0xe   :  { %948 = vmatprep.subr.bf16.mxu1 %v1068_v14  ;;  %v36_v37 = vpack.c.bf16 %v29_v36, %v22_v35  ;;  %v25_v39 = vld [vmem:[%s1418_s0 + $0x18] sm:$0xff]  ;;  %v24_v44 = vld [vmem:[%s1418_s0 + $0x10] sm:$0xff]  ;;  %v31_v45 = vld [vmem:[%s1418_s0 + $0x48] sm:$0xff] }
   0xf   :  { %927 = vmatpush3.bf16.msra.mxu0 %v1067_v13  ;;  %v39_v41 = vpack.c.bf16 %v32_v40, %v25_v39  ;;  %v38_v46 = vpack.c.bf16 %v31_v45, %v24_v44  ;;  %v1088_v47 = vld [vmem:[%s1417_s1 + $0x148] sm:$0xff]   ;;  %v1090_v49 = vld [vmem:[%s1417_s1 + $0x150] sm:$0xff]   ;;  %v1092_v51 = vld [vmem:[%s1417_s1 + $0x158] sm:$0xff]  }
  0x10   :  { %928 = vmatprep.subr.bf16.mxu0 %v1070_v16  ;;  %v1089_v48 = vld [vmem:[%s1417_s1 + $0x108] sm:$0xff]   ;;  %v1091_v50 = vld [vmem:[%s1417_s1 + $0x110] sm:$0xff]   ;;  %v1093_v52 = vld [vmem:[%s1417_s1 + $0x118] sm:$0xff]  }
  0x11   :  { %949 = vmatpush3.bf16.msra.mxu1 %v1069_v15  ;;  %516 = vmatprep.mubr.bf16.mxu1 %v39_v41  ;;  %v1094_v53 = vld [vmem:[%s1417_s1 + $0x160] sm:$0xff]   ;;  %v1096_v55 = vld [vmem:[%s1417_s1 + $0x168] sm:$0xff]   ;;  %v28_v61 = vld [vmem:[%s1418_s0 + $0x30] sm:$0xff] }
  0x12   :  { %950 = vmatprep.subr.bf16.mxu1 %v1072_v18  ;;  %v1095_v54 = vld [vmem:[%s1417_s1 + $0x120] sm:$0xff]   ;;  %v27_v57 = vld [vmem:[%s1418_s0 + $0x28] sm:$0xff]  ;;  %v1098_v63 = vld [vmem:[%s1417_s1 + $0x170] sm:$0xff]  }
  0x13   :  { %929 = vmatpush3.bf16.msra.mxu0 %v1071_v17  ;;  %v1102_v56 = vld [vmem:[%s1417_s1 + $0x180] sm:$0xff]   ;;  %v1097_v59 = vld [vmem:[%s1417_s1 + $0x128] sm:$0xff]   ;;  %v1099_v1 = vld [vmem:[%s1417_s1 + $0x130] sm:$0xff]  }
  0x14   :  { %930 = vmatprep.subr.bf16.mxu0 %v1074_v20  ;;  %v34_v58 = vld [vmem:[%s1418_s0 + $0x60] sm:$0xff]  ;;  %v35_v62 = vld [vmem:[%s1418_s0 + $0x68] sm:$0xff]  ;;  %v1100_v2 = vld [vmem:[%s1417_s1 + $0x178] sm:$0xff]  }
  0x15   :  { %951 = vmatpush3.bf16.msra.mxu1 %v1073_v19  ;;  %v41_v60 = vpack.c.bf16 %v34_v58, %v27_v57  ;;  %v42_v0 = vpack.c.bf16 %v35_v62, %v28_v61  ;;  %v1101_v3 = vld [vmem:[%s1417_s1 + $0x138] sm:$0xff]   ;;  %v26_v4 = vld [vmem:[%s1418_s0 + $0x20] sm:$0xff]  ;;  %v1104_v8 = vld [vmem:[%s1419_s2 + $0x8] sm:$0xff]  }
  0x16   :  { %952 = vmatprep.subr.bf16.mxu1 %v1076_v22  ;;  %v33_v5 = vld [vmem:[%s1418_s0 + $0x58] sm:$0xff]  ;;  %v1103_v7 = vld [vmem:[%s1419_s2] sm:$0xff]   ;;  %v1105_v9 = vld [vmem:[%s1419_s2 + $0x10] sm:$0xff]  }
  0x17   :  { %931 = vmatpush3.bf16.msra.mxu0 %v1075_v21  ;;  %v40_v6 = vpack.c.bf16 %v33_v5, %v26_v4  ;;  %v1106_v10 = vld [vmem:[%s1419_s2 + $0x18] sm:$0xff]   ;;  %v1107_v11 = vld [vmem:[%s1419_s2 + $0x20] sm:$0xff]   ;;  %v1108_v12 = vld [vmem:[%s1419_s2 + $0x28] sm:$0xff]   ;;  %v141_v21 = vlaneseq }
  0x18   :  { %932 = vmatprep.subr.bf16.mxu0 %v1078_v24  ;;  %v1109_v13 = vld [vmem:[%s1419_s2 + $0x30] sm:$0xff]   ;;  %v1110_v14 = vld [vmem:[%s1419_s2 + $0x38] sm:$0xff]   ;;  %v1111_v15 = vld [vmem:[%s1420_s3] sm:$0xff]  }
  0x19   :  { %953 = vmatpush3.bf16.msra.mxu1 %v1077_v23  ;;  %v1112_v16 = vld [vmem:[%s1420_s3 + $0x8] sm:$0xff]   ;;  %v1113_v17 = vld [vmem:[%s1420_s3 + $0x10] sm:$0xff]   ;;  %v1114_v18 = vld [vmem:[%s1420_s3 + $0x18] sm:$0xff]   ;;  %v142_v22 = vshrl.u32 %v141_v21, 7 }
  0x1a   :  { %954 = vmatprep.subr.bf16.mxu1 %v1080_v26  ;;  %v1115_v19 = vld [vmem:[%s1420_s3 + $0x20] sm:$0xff]   ;;  %v1116_v20 = vld [vmem:[%s1420_s3 + $0x28] sm:$0xff]   ;;  %v1118_v61 = vld [vmem:[%s1420_s3 + $0x38] sm:$0xff]  }
  0x1b   :  { %933 = vmatpush3.bf16.msra.mxu0 %v1079_v25  ;;  %v143_v23 = vsub.s32 0, %v142_v22  ;;  %v21_v24 = vld [vmem:[%s1421_s4] sm:$0xff]  ;;  %v628_v62 = vsub.s32 1, %v142_v22 }
  0x1c   :  { %934 = vmatprep.subr.bf16.mxu0 %v1082_v28 }
  0x1d   :  { %955 = vmatpush3.bf16.msra.mxu1 %v1081_v27  ;;  %v144_v26 = vrot.slane %v21_v24, %v143_v23 }
  0x1e   :  { %956 = vmatprep.subr.bf16.mxu1 %v1084_v30 }
  0x1f   :  { %935 = vmatpush3.bf16.msra.mxu0 %v1083_v29 }
  0x20   :  { %964 = vmatprep.subr.bf16.mxu0 %v1086_v38 }
  0x21   :  { %957 = vmatpush3.bf16.msra.mxu1 %v1085_v34 }
  0x22   :  { %1006 = vmatprep.subr.bf16.mxu1 %v1119_v43  ;;  %476 = vmatmul.mubr.bf16.vlgmr.msra.gmra.mrb[0].mxu0 %v36_v37 }
  0x23   :  { %965 = vmatpush3.bf16.msra.mxu0 %v1087_v42  ;;  %557 = vmatprep.mubr.bf16.mxu0 %v41_v60  ;;  %v1117_v60 = vld [vmem:[%s1420_s3 + $0x30] sm:$0xff]  }
  0x24   :  { %517 = vmatmul.mubr.bf16.vlgmr.msra.gmra.mrb[0].mxu1 %v38_v46  ;;  %966 = vmatprep.subr.bf16.mxu0 %v1088_v47 }
  0x25   :  { %1008 = vmatprep.mubr.msk.bf16.mxu1 %vm1120_vm0, %v1119_v43  ;;  %1007 = vmatpush3.bf16.msra.mxu1 %v1102_v56 }
  0x26   :  { %1012 = vmatprep.subr.bf16.mxu1 %v1119_v43 }
  0x27   :  { %967 = vmatpush3.bf16.msra.mxu0 %v1089_v48 }
  0x28   :  { %968 = vmatprep.subr.bf16.mxu0 %v1090_v49 }
  0x2b   :  { %969 = vmatpush3.bf16.msra.mxu0 %v1091_v50 }
  0x2c   :  { %970 = vmatprep.subr.bf16.mxu0 %v1092_v51  ;;  %1009 = vmatmul.mubr.msk.bf16.vlgmr.msra.gmra.mrb[4].mxu1 %vm439_vm1, %v42_v0 }
  0x2d   :  { %1028 = vmatprep.mubr.msk.bf16.mxu1 %vm1120_vm0, %v1119_v43  ;;  %1013 = vmatpush3.bf16.msra.mxu1 %v1103_v7 }
  0x2e   :  { %1014 = vmatprep.subr.bf16.mxu1 %v1119_v43 }
  0x2f   :  { %971 = vmatpush3.bf16.msra.mxu0 %v1093_v52 }
  0x30   :  { %972 = vmatprep.subr.bf16.mxu0 %v1094_v53 }
  0x31   :  { %1015 = vmatpush3.bf16.msra.mxu1 %v1104_v8 }
  0x32   :  { %1016 = vmatprep.subr.bf16.mxu1 %v1119_v43 }
  0x33   :  { %973 = vmatpush3.bf16.msra.mxu0 %v1095_v54 }
  0x34   :  { %974 = vmatprep.subr.bf16.mxu0 %v1096_v55 }
  0x35   :  { %1017 = vmatpush3.bf16.msra.mxu1 %v1105_v9  ;;  %v740_v9 = vsub.s32 2, %v142_v22 }
  0x36   :  { %1018 = vmatprep.subr.bf16.mxu1 %v1119_v43 }
  0x37   :  { %975 = vmatpush3.bf16.msra.mxu0 %v1097_v59 }
  0x38   :  { %976 = vmatprep.subr.bf16.mxu0 %v1098_v63  ;;  %v629_v63 = vrot.slane %v21_v24, %v628_v62 }
  0x39   :  { %1019 = vmatpush3.bf16.msra.mxu1 %v1106_v10  ;;  %v741_v10 = vrot.slane %v21_v24, %v740_v9 }
  0x3a   :  { %1020 = vmatprep.subr.bf16.mxu1 %v1119_v43 }
  0x3b   :  { %977 = vmatpush3.bf16.msra.mxu0 %v1099_v1 }
  0x3c   :  { %978 = vmatprep.subr.bf16.mxu0 %v1100_v2 }
  0x3d   :  { %1021 = vmatpush3.bf16.msra.mxu1 %v1107_v11 }
  0x3e   :  { %1022 = vmatprep.subr.bf16.mxu1 %v1119_v43 }
  0x3f   :  { %979 = vmatpush3.bf16.msra.mxu0 %v1101_v3 }
  0x40   :  { %1032 = vmatprep.subr.bf16.mxu0 %v1119_v43 }
  0x41   :  { %1023 = vmatpush3.bf16.msra.mxu1 %v1108_v12 }
  0x42   :  { %558 = vmatmul.mubr.bf16.vlgmr.msra.gmra.mrb[4].mxu0 %v40_v6  ;;  %1024 = vmatprep.subr.bf16.mxu1 %v1119_v43 }
  0x43   :  { %1048 = vmatprep.mubr.msk.bf16.mxu0 %vm1120_vm0, %v1119_v43  ;;  %1033 = vmatpush3.bf16.msra.mxu0 %v1111_v15 }
  0x44   :  { %1034 = vmatprep.subr.bf16.mxu0 %v1119_v43 }
  0x45   :  { %1025 = vmatpush3.bf16.msra.mxu1 %v1109_v13 }
  0x46   :  { %1026 = vmatprep.subr.bf16.mxu1 %v1119_v43 }
  0x47   :  { %1035 = vmatpush3.bf16.msra.mxu0 %v1112_v16 }
  0x48   :  { %1036 = vmatprep.subr.bf16.mxu0 %v1119_v43 }
  0x49   :  { %1027 = vmatpush3.bf16.msra.mxu1 %v1110_v14 }
  0x4b   :  { %1037 = vmatpush3.bf16.msra.mxu0 %v1113_v17 }
  0x4c   :  { %1038 = vmatprep.subr.bf16.mxu0 %v1119_v43 }
  0x4f   :  { %1039 = vmatpush3.bf16.msra.mxu0 %v1114_v18 }
  0x50   :  { %1040 = vmatprep.subr.bf16.mxu0 %v1119_v43 }
  0x53   :  { %1041 = vmatpush3.bf16.msra.mxu0 %v1115_v19 }
  0x54   :  { %1042 = vmatprep.subr.bf16.mxu0 %v1119_v43 }
  0x57   :  { %1043 = vmatpush3.bf16.msra.mxu0 %v1116_v20 }
  0x58   :  { %1044 = vmatprep.subr.bf16.mxu0 %v1119_v43 }
  0x5b   :  { %1045 = vmatpush3.bf16.msra.mxu0 %v1117_v60 }
  0x5c   :  { %1046 = vmatprep.subr.bf16.mxu0 %v1119_v43 }
  0x5f   :  { %1047 = vmatpush3.bf16.msra.mxu0 %v1118_v61 }
  0xf5   :  { %v936_v25 = vpop.f32.mrb[0].mxu0 }
  0xf6   :  { %v937_v27 = vpop.f32.mrb[1].mxu0 }
  0xf7   :  { %v938_v28 = vadd.f32 %v937_v27, %v936_v25  ;;  %v939_v29 = vpop.f32.mrb[2].mxu0  ;;  %v958_v30 = vpop.f32.mrb[0].mxu1 }
  0xf8   :  { %v940_v31 = vpop.f32.mrb[3].mxu0  ;;  %v959_v34 = vpop.f32.mrb[1].mxu1 }
  0xf9   :  { %v478_v32 = vadd.f32 %v938_v28, %v144_v26  ;;  %v941_v33 = vadd.f32 %v940_v31, %v939_v29  ;;  %v960_v35 = vadd.f32 %v959_v34, %v958_v30  ;;  %v961_v36 = vpop.f32.mrb[2].mxu1 }
  0xfa   :  { %v962_v38 = vpop.f32.mrb[3].mxu1 }
  0xfb   :  { %v481_v37 = vadd.f32 %v941_v33, %v144_v26  ;;  %v519_v39 = vadd.f32 %v960_v35, %v478_v32  ;;  %v963_v40 = vadd.f32 %v962_v38, %v961_v36 }
  0xfd   :  { %v522_v41 = vadd.f32 %v963_v40, %v481_v37 }
  0xff   :  { %v600_v42 = vpop.f32.mrb[4].mxu1 }
 0x100   :  { %v1010_v44 = vpop.f32.mrb[5].mxu1 }
 0x101   :  { %v603_v45 = vpop.f32.mrb[6].mxu1 }
 0x102   :  { %v1011_v46 = vpop.f32.mrb[7].mxu1 }
 0x115   :  { %v980_v47 = vpop.f32.mrb[4].mxu0 }
 0x116   :  { %v981_v48 = vpop.f32.mrb[5].mxu0 }
 0x117   :  { %v982_v49 = vadd.f32 %v981_v48, %v980_v47  ;;  %v983_v50 = vpop.f32.mrb[6].mxu0 }
 0x118   :  { %v984_v51 = vpop.f32.mrb[7].mxu0 }
 0x119   :  { %v560_v52 = vadd.f32 %v982_v49, %v519_v39  ;;  %v985_v53 = vadd.f32 %v984_v51, %v983_v50 }
 0x11b   :  { %v601_v54 = vadd.f32 %v600_v42, %v560_v52  ;;  %v563_v55 = vadd.f32 %v985_v53, %v522_v41 }
 0x11d   :  { %v604_v56 = vadd.f32 %v603_v45, %v563_v55  ;;  %v607_v57 = vmax.f32 %v601_v54, 0.0 }
 0x11f   :  { %v608_v58 = vmax.f32 %v604_v56, 0.0 }
 0x121   :  { %v609_v59 = vpack.c.bf16 %v608_v58, %v607_v57 }
 0x123   :  { %1029 = vmatmul.mubr.bf16.vlgmr.msra.gmra.mrb[8].mxu1 %v609_v59 }
 0x1f6   :  { %v712_v0 = vpop.f32.mrb[8].mxu1 }
 0x1f7   :  { %v713_v1 = vadd.f32 %v712_v0, %v629_v63  ;;  %v1030_v2 = vpop.f32.mrb[9].mxu1 }
 0x1f8   :  { %v715_v3 = vpop.f32.mrb[10].mxu1 }
 0x1f9   :  { %v716_v4 = vadd.f32 %v715_v3, %v629_v63  ;;  %v1031_v5 = vpop.f32.mrb[11].mxu1  ;;  %v719_v6 = vmax.f32 %v713_v1, 0.0 }
 0x1fb   :  { %v720_v7 = vmax.f32 %v716_v4, 0.0 }
 0x1fd   :  { %v721_v8 = vpack.c.bf16 %v720_v7, %v719_v6 }
 0x1ff   :  { %1049 = vmatmul.mubr.bf16.vlgmr.msra.gmra.mrb[8].mxu0 %v721_v8 }
 0x2d2   :  { %v824_v43 = vpop.f32.mrb[8].mxu0 }
 0x2d3   :  { %v1050_v11 = vpop.f32.mrb[9].mxu0  ;;  %v825_v13 = vadd.f32 %v824_v43, %v741_v10 }
 0x2d4   :  { %v827_v12 = vpop.f32.mrb[10].mxu0 }
 0x2d5   :  { %v828_v14 = vadd.f32 %v827_v12, %v741_v10  ;;  %v1051_v15 = vpop.f32.mrb[11].mxu0 }
 0x2d7   :  { %v918_v16 = vpack.c.bf16 %v828_v14, %v825_v13 }
 0x2d9   :  { %919 = vst [vmem:[%s1422_s5] sm:$0xff] %v918_v16  }

</bundles_post_ra>
